<compile_context>
chip_gen: v5e
topology: v5e:2x2
jax: 0.10.0
libtpu: 0.0.40
codegen_flags: <defaults>
</compile_context>

<pallas_src>
import functools

import jax
import jax.numpy as jnp
from jax.experimental import pallas as pl
from jax.experimental.pallas import tpu as pltpu

EPS = 1e-5          # nn.BatchNorm1d default
NEG_SLOPE = 0.01    # nn.LeakyReLU default
_LANE = 128
_SUBLANE = 8
_VMEM_LIMIT = 32 * 1024 * 1024


def _round_up(x, m):
    return (x + m - 1) // m * m


# --------------------------------------------------------------------------------
# Phase 1: tiled Linear (bf16 MXU matmul, f32 accumulate) + per-channel partial stats
# --------------------------------------------------------------------------------
def _linear_stats_kernel(x_ref, w_ref, b_ref, y_ref, stats_ref, *, b_true, tb):
    # x_ref:     (TB, Fin)    bf16
    # w_ref:     (Fin, FoutP) bf16   (pre-transposed, zero-padded weight)
    # b_ref:     (1, FoutP)   f32    (zero-padded bias)
    # y_ref:     (TB, FoutP)  f32    pre-normalization activations (written out)
    # stats_ref: (2, FoutP)   f32    per-channel lane-wise [sum; sum_sq] accumulator
    bt = pl.program_id(1)

    @pl.when(bt == 0)
    def _init():
        stats_ref[...] = jnp.zeros_like(stats_ref)

    y = jnp.dot(x_ref[...], w_ref[...], preferred_element_type=jnp.float32) + b_ref[...]
    y_ref[...] = y

    # Padded batch rows must not contribute to the BN statistics.
    if b_true % tb == 0:
        ym = y
    else:
        row = bt * tb + jax.lax.broadcasted_iota(jnp.int32, y.shape, 0)
        ym = jnp.where(row < b_true, y, 0.0)

    stats_ref[0:1, :] += jnp.sum(ym, axis=0, keepdims=True)
    stats_ref[1:2, :] += jnp.sum(ym * ym, axis=0, keepdims=True)


# --------------------------------------------------------------------------------
# Phase 2: BatchNorm (folded scale/shift) + LeakyReLU, pure streaming, lane-dense
# --------------------------------------------------------------------------------
def _bn_lrelu_kernel(y_ref, stats_ref, gamma_ref, beta_ref, o_ref, *, inv_n):
    # y_ref:     (TB, FoutP) f32
    # stats_ref: (2, FoutP)  f32   per-channel [sum; sum_sq] (lane-wise partials)
    # gamma_ref: (C,) f32 in SMEM;  beta_ref: (C,) f32 in SMEM
    c = pl.program_id(0)
    s = jnp.sum(stats_ref[0:1, :], keepdims=True)          # (1, 1)
    sq = jnp.sum(stats_ref[1:2, :], keepdims=True)          # (1, 1)
    mean = s * inv_n
    var = sq * inv_n - mean * mean                           # biased variance (f32 accum)
    a = gamma_ref[c] * jax.lax.rsqrt(var + EPS)              # folded scale
    shift = beta_ref[c] - mean * a                           # folded shift
    yn = y_ref[...] * a + shift                              # one FMA per element
    o_ref[...] = jnp.maximum(yn, NEG_SLOPE * yn)             # LeakyReLU


@functools.partial(jax.jit, static_argnames=("fout",))
def _fc_forward(x, w_p, b_p, gamma, beta, *, fout):
    B, C, Fin = x.shape
    FoutP = w_p.shape[1]

    # Row tile along the batch axis (per channel); whole (padded) Fout per tile so
    # BN statistics stay consistent without cross-tile lane bookkeeping.
    TB = 256 if B >= 256 else _round_up(B, _SUBLANE)
    Bp = _round_up(B, TB)
    nbt = Bp // TB

    # Layout plumbing (wrapper-side, not in-kernel): channel-major, padded, bf16.
    x_t = jnp.transpose(x, (1, 0, 2)).astype(jnp.bfloat16)      # (C, B, Fin)
    x_p = jnp.pad(x_t, ((0, 0), (0, Bp - B), (0, 0)))           # (C, Bp, Fin)

    # ---- Phase 1: matmul + per-channel partial (sum, sum_sq) ----
    kernel1 = functools.partial(_linear_stats_kernel, b_true=B, tb=TB)
    y, stats = pl.pallas_call(
        kernel1,
        grid=(C, nbt),
        in_specs=[
            pl.BlockSpec((None, TB, Fin), lambda c, bt: (c, bt, 0)),
            pl.BlockSpec((Fin, FoutP), lambda c, bt: (0, 0)),
            pl.BlockSpec((1, FoutP), lambda c, bt: (0, 0)),
        ],
        out_specs=[
            pl.BlockSpec((None, TB, FoutP), lambda c, bt: (c, bt, 0)),
            pl.BlockSpec((None, 2, FoutP), lambda c, bt: (c, 0, 0)),   # accumulator
        ],
        out_shape=[
            jax.ShapeDtypeStruct((C, Bp, FoutP), jnp.float32),
            jax.ShapeDtypeStruct((C, 2, FoutP), jnp.float32),
        ],
        compiler_params=pltpu.CompilerParams(
            dimension_semantics=("parallel", "arbitrary"),
            vmem_limit_bytes=_VMEM_LIMIT,
        ),
    )(x_p, w_p, b_p)

    # ---- Phase 2: normalize + LeakyReLU (mem-bound streaming pass) ----
    kernel2 = functools.partial(_bn_lrelu_kernel, inv_n=1.0 / float(B * fout))
    out_p = pl.pallas_call(
        kernel2,
        grid=(C, nbt),
        in_specs=[
            pl.BlockSpec((None, TB, FoutP), lambda c, bt: (c, bt, 0)),
            pl.BlockSpec((None, 2, FoutP), lambda c, bt: (c, 0, 0)),
            pl.BlockSpec(memory_space=pltpu.MemorySpace.SMEM),
            pl.BlockSpec(memory_space=pltpu.MemorySpace.SMEM),
        ],
        out_specs=pl.BlockSpec((None, TB, FoutP), lambda c, bt: (c, bt, 0)),
        out_shape=jax.ShapeDtypeStruct((C, Bp, FoutP), jnp.float32),
        compiler_params=pltpu.CompilerParams(
            dimension_semantics=("parallel", "parallel"),
            vmem_limit_bytes=_VMEM_LIMIT,
        ),
    )(y, stats, gamma, beta)

    # Unpad and restore the PyTorch (B, C, Fout) layout.
    return jnp.transpose(out_p[:, :B, :fout], (1, 0, 2))


def prepare_params(w, b, gamma, beta):
    """One-time parameter prep (outside the hot path): pre-transpose the Linear weight
    to (Fin, FoutP) with Fout padded to a lane-dense multiple of 128, cast the matmul
    operand to bf16, keep bias/BN params in f32."""
    fout, fin = w.shape
    foutp = _round_up(fout, _LANE)
    w_p = jnp.pad(jnp.transpose(w).astype(jnp.bfloat16), ((0, 0), (0, foutp - fout)))
    b_p = jnp.pad(b.astype(jnp.float32), (0, foutp - fout)).reshape(1, foutp)
    return {
        "w": w_p,
        "b": b_p,
        "gamma": gamma.astype(jnp.float32),
        "beta": beta.astype(jnp.float32),
        "fout": int(fout),
    }


def fully_connected(x, params):
    """x: (B, C, Fin) -> (B, C, Fout)."""
    # TODO(synk): BatchNorm running_mean/running_var updates are stateful training
    # bookkeeping and do not affect the forward output; not emitted by the kernels.
    return _fc_forward(x, params["w"], params["b"], params["gamma"], params["beta"],
                       fout=params["fout"])


def _reference(x, w, b, gamma, beta, matmul_dtype=jnp.float32):
    """Pure-JAX reference mirroring the PyTorch forward (training-mode BN)."""
    y = jnp.einsum("bcf,of->bco", x.astype(matmul_dtype), w.astype(matmul_dtype),
                   preferred_element_type=jnp.float32)
    y = y + b[None, None, :]
    mean = jnp.mean(y, axis=(0, 2), keepdims=True)
    var = jnp.mean((y - mean) ** 2, axis=(0, 2), keepdims=True)
    yn = (y - mean) * jax.lax.rsqrt(var + EPS)
    yn = yn * gamma[None, :, None] + beta[None, :, None]
    return jnp.where(yn >= 0, yn, NEG_SLOPE * yn)


if __name__ == "__main__":
    B, C, FIN, FOUT = 2, 4, 16, 32   # batch, num_channels, channels_in, channels_out

    key = jax.random.PRNGKey(0)
    kx, kw, kb = jax.random.split(key, 3)

    x = jax.random.normal(kx, (B, C, FIN), dtype=jnp.float32)

    # Deterministic params mimicking PyTorch defaults:
    #   Linear: U(-1/sqrt(fan_in), 1/sqrt(fan_in)); BatchNorm1d: weight=1, bias=0.
    bound = 1.0 / (FIN ** 0.5)
    w = jax.random.uniform(kw, (FOUT, FIN), minval=-bound, maxval=bound, dtype=jnp.float32)
    b = jax.random.uniform(kb, (FOUT,), minval=-bound, maxval=bound, dtype=jnp.float32)
    gamma = jnp.ones((C,), dtype=jnp.float32)
    beta = jnp.zeros((C,), dtype=jnp.float32)

    params = prepare_params(w, b, gamma, beta)
    out = jax.block_until_ready(fully_connected(x, params))
    assert out.shape == (B, C, FOUT)

    # Matched-precision check (bf16 matmul operands, f32 accumulation/BN): tight.
    ref_bf16 = _reference(x, w, b, gamma, beta, matmul_dtype=jnp.bfloat16)
    assert jnp.allclose(out, ref_bf16, atol=1e-3, rtol=1e-3), "mismatch vs bf16-matmul reference"

    # Full-f32 PyTorch-style reference: tolerance reflects bf16 MXU operands.
    ref_f32 = _reference(x, w, b, gamma, beta, matmul_dtype=jnp.float32)
    assert jnp.allclose(out, ref_f32, atol=3e-2, rtol=3e-2), "mismatch vs f32 reference"

    print("KERNEL_OK")
</pallas_src>

<mosaic_0001>
module attributes {stable_mosaic.version = 11 : i64} {
  func.func @_bn_lrelu_kernel(%arg0: i32, %arg1: i32, %arg2: memref<1x8x128xf32, #tpu.memory_space<vmem>>, %arg3: memref<1x2x128xf32, #tpu.memory_space<vmem>>, %arg4: memref<4xf32, #tpu.memory_space<smem>>, %arg5: memref<4xf32, #tpu.memory_space<smem>>, %arg6: memref<1x8x128xf32, #tpu.memory_space<vmem>>) attributes {dimension_semantics = [#tpu.dimension_semantics<parallel>, #tpu.dimension_semantics<parallel>], iteration_bounds = array<i64: 4, 1>, scalar_prefetch = 0 : i64, scratch_operands = 0 : i64, tpu.core_type = #tpu.core_type<tc>, window_params = [{transform_indices = @transform_0, window_bounds = array<i64: 1, 8, 128>}, {transform_indices = @transform_1, window_bounds = array<i64: 1, 2, 128>}, {transform_indices = @transform_2, window_bounds = array<i64: 4>}, {transform_indices = @transform_3, window_bounds = array<i64: 4>}, {transform_indices = @transform_4, window_bounds = array<i64: 1, 8, 128>}]} {
    %c0 = arith.constant 0 : index
    %c0_0 = arith.constant 0 : index
    %c0_1 = arith.constant 0 : index
    %0 = vector.load %arg3[%c0, %c0_0, %c0_1] : memref<1x2x128xf32, #tpu.memory_space<vmem>>, vector<1x1x128xf32>
    %1 = vector.shape_cast %0 : vector<1x1x128xf32> to vector<1x128xf32>
    %2 = vector.shape_cast %1 : vector<1x128xf32> to vector<1x1x128xf32>
    %cst = arith.constant dense<0.000000e+00> : vector<1xf32>
    %3 = vector.multi_reduction <add>, %2, %cst [1, 2] : vector<1x1x128xf32> to vector<1xf32>
    %4 = vector.shape_cast %3 : vector<1xf32> to vector<1x1x1xf32>
    %5 = vector.extract %4[0, 0, 0] : f32 from vector<1x1x1xf32>
    %6 = vector.broadcast %5 : f32 to vector<1x1xf32>
    %c0_2 = arith.constant 0 : index
    %c1 = arith.constant 1 : index
    %c0_3 = arith.constant 0 : index
    %7 = vector.load %arg3[%c0_2, %c1, %c0_3] : memref<1x2x128xf32, #tpu.memory_space<vmem>>, vector<1x1x128xf32>
    %8 = vector.shape_cast %7 : vector<1x1x128xf32> to vector<1x128xf32>
    %9 = vector.shape_cast %8 : vector<1x128xf32> to vector<1x1x128xf32>
    %cst_4 = arith.constant dense<0.000000e+00> : vector<1xf32>
    %10 = vector.multi_reduction <add>, %9, %cst_4 [1, 2] : vector<1x1x128xf32> to vector<1xf32>
    %11 = vector.shape_cast %10 : vector<1xf32> to vector<1x1x1xf32>
    %12 = vector.extract %11[0, 0, 0] : f32 from vector<1x1x1xf32>
    %13 = vector.broadcast %12 : f32 to vector<1x1xf32>
    %cst_5 = arith.constant 1.562500e-02 : f32
    %14 = vector.broadcast %cst_5 : f32 to vector<1x1xf32>
    %15 = arith.mulf %6, %14 : vector<1x1xf32>
    %cst_6 = arith.constant 1.562500e-02 : f32
    %16 = vector.broadcast %cst_6 : f32 to vector<1x1xf32>
    %17 = arith.mulf %13, %16 : vector<1x1xf32>
    %18 = arith.mulf %15, %15 : vector<1x1xf32>
    %19 = arith.subf %17, %18 : vector<1x1xf32>
    %20 = arith.index_cast %arg0 : i32 to index
    %21 = memref.load %arg4[%20] : memref<4xf32, #tpu.memory_space<smem>>
    %cst_7 = arith.constant 9.99999974E-6 : f32
    %22 = vector.broadcast %cst_7 : f32 to vector<1x1xf32>
    %23 = arith.addf %19, %22 : vector<1x1xf32>
    %24 = math.rsqrt %23 : vector<1x1xf32>
    %25 = vector.broadcast %21 : f32 to vector<1x1xf32>
    %26 = arith.mulf %25, %24 : vector<1x1xf32>
    %27 = arith.index_cast %arg0 : i32 to index
    %28 = memref.load %arg5[%27] : memref<4xf32, #tpu.memory_space<smem>>
    %29 = arith.mulf %15, %26 : vector<1x1xf32>
    %30 = vector.broadcast %28 : f32 to vector<1x1xf32>
    %31 = arith.subf %30, %29 : vector<1x1xf32>
    %c0_8 = arith.constant 0 : index
    %c0_9 = arith.constant 0 : index
    %c0_10 = arith.constant 0 : index
    %32 = vector.load %arg2[%c0_8, %c0_9, %c0_10] : memref<1x8x128xf32, #tpu.memory_space<vmem>>, vector<1x8x128xf32>
    %33 = vector.shape_cast %32 : vector<1x8x128xf32> to vector<8x128xf32>
    %34 = vector.broadcast %26 : vector<1x1xf32> to vector<8x128xf32>
    %35 = arith.mulf %33, %34 : vector<8x128xf32>
    %36 = vector.broadcast %31 : vector<1x1xf32> to vector<8x128xf32>
    %37 = arith.addf %35, %36 : vector<8x128xf32>
    %cst_11 = arith.constant 0.00999999977 : f32
    %38 = vector.broadcast %cst_11 : f32 to vector<8x128xf32>
    %39 = arith.mulf %38, %37 : vector<8x128xf32>
    %40 = arith.maximumf %37, %39 : vector<8x128xf32>
    %c0_12 = arith.constant 0 : index
    %c0_13 = arith.constant 0 : index
    %c0_14 = arith.constant 0 : index
    %41 = vector.load %arg6[%c0_12, %c0_13, %c0_14] : memref<1x8x128xf32, #tpu.memory_space<vmem>>, vector<1x8x128xf32>
    %42 = vector.shape_cast %41 : vector<1x8x128xf32> to vector<8x128xf32>
    %43 = vector.shape_cast %40 : vector<8x128xf32> to vector<1x8x128xf32>
    tpu.vector_store %arg6[%c0_12, %c0_13, %c0_14], %43 {strides = array<i32>} : memref<1x8x128xf32, #tpu.memory_space<vmem>>, vector<1x8x128xf32>,
    return
  }
  func.func @transform_0(%arg0: i32, %arg1: i32) -> (i32, i32, i32) {
    %c0_i32 = arith.constant 0 : i32
    %c0_i32_0 = arith.constant 0 : i32
    return %arg0, %arg1, %c0_i32 : i32, i32, i32
  }
  func.func @transform_1(%arg0: i32, %arg1: i32) -> (i32, i32, i32) {
    %c0_i32 = arith.constant 0 : i32
    %c0_i32_0 = arith.constant 0 : i32
    %c0_i32_1 = arith.constant 0 : i32
    return %arg0, %c0_i32, %c0_i32_0 : i32, i32, i32
  }
  func.func @transform_2(%arg0: i32, %arg1: i32) -> i32 {
    %c0_i32 = arith.constant 0 : i32
    %c0_i32_0 = arith.constant 0 : i32
    return %c0_i32 : i32
  }
  func.func @transform_3(%arg0: i32, %arg1: i32) -> i32 {
    %c0_i32 = arith.constant 0 : i32
    %c0_i32_0 = arith.constant 0 : i32
    return %c0_i32 : i32
  }
  func.func @transform_4(%arg0: i32, %arg1: i32) -> (i32, i32, i32) {
    %c0_i32 = arith.constant 0 : i32
    %c0_i32_0 = arith.constant 0 : i32
    return %arg0, %arg1, %c0_i32 : i32, i32, i32
  }
}

module attributes {stable_mosaic.version = 11 : i64} {
  func.func @_linear_stats_kernel(%arg0: i32, %arg1: i32, %arg2: memref<1x8x16xbf16, #tpu.memory_space<vmem>>, %arg3: memref<16x128xbf16, #tpu.memory_space<vmem>>, %arg4: memref<1x128xf32, #tpu.memory_space<vmem>>, %arg5: memref<1x8x128xf32, #tpu.memory_space<vmem>>, %arg6: memref<1x2x128xf32, #tpu.memory_space<vmem>>) attributes {dimension_semantics = [#tpu.dimension_semantics<parallel>, #tpu.dimension_semantics<arbitrary>], iteration_bounds = array<i64: 4, 1>, scalar_prefetch = 0 : i64, scratch_operands = 0 : i64, tpu.core_type = #tpu.core_type<tc>, window_params = [{transform_indices = @transform_0, window_bounds = array<i64: 1, 8, 16>}, {pipeline_mode = #tpu.pipeline_mode<synchronous>, transform_indices = @transform_1, window_bounds = array<i64: 16, 128>}, {pipeline_mode = #tpu.pipeline_mode<synchronous>, transform_indices = @transform_2, window_bounds = array<i64: 1, 128>}, {transform_indices = @transform_3, window_bounds = array<i64: 1, 8, 128>}, {transform_indices = @transform_4, window_bounds = array<i64: 1, 2, 128>}]} {
    %c0_i32 = arith.constant 0 : i32
    %0 = arith.cmpi eq, %arg1, %c0_i32 : i32
    %1 = arith.extui %0 : i1 to i32
    %c0_i32_0 = arith.constant 0 : i32
    %2 = arith.cmpi ne, %1, %c0_i32_0 : i32
    scf.if %2 {
      %cst_24 = arith.constant 0.000000e+00 : f32
      %38 = vector.broadcast %cst_24 : f32 to vector<2x128xf32>
      %c0_25 = arith.constant 0 : index
      %c0_26 = arith.constant 0 : index
      %c0_27 = arith.constant 0 : index
      %39 = vector.load %arg6[%c0_25, %c0_26, %c0_27] : memref<1x2x128xf32, #tpu.memory_space<vmem>>, vector<1x2x128xf32>
      %40 = vector.shape_cast %39 : vector<1x2x128xf32> to vector<2x128xf32>
      %41 = vector.shape_cast %38 : vector<2x128xf32> to vector<1x2x128xf32>
      tpu.vector_store %arg6[%c0_25, %c0_26, %c0_27], %41 {strides = array<i32>} : memref<1x2x128xf32, #tpu.memory_space<vmem>>, vector<1x2x128xf32>,
    } else {
    }
    %c0 = arith.constant 0 : index
    %c0_1 = arith.constant 0 : index
    %c0_2 = arith.constant 0 : index
    %3 = vector.load %arg2[%c0, %c0_1, %c0_2] : memref<1x8x16xbf16, #tpu.memory_space<vmem>>, vector<1x8x16xbf16>
    %4 = vector.shape_cast %3 : vector<1x8x16xbf16> to vector<8x16xbf16>
    %c0_3 = arith.constant 0 : index
    %c0_4 = arith.constant 0 : index
    %5 = vector.load %arg3[%c0_3, %c0_4] : memref<16x128xbf16, #tpu.memory_space<vmem>>, vector<16x128xbf16>
    %cst = arith.constant dense<0.000000e+00> : vector<8x128xf32>
    %6 = tpu.matmul %4, %5, %cst {dimension_numbers = #tpu.dot_dimension_numbers<[1], [0], [0], [1], [0, 0, 1, 1], [], []>} : vector<8x16xbf16>, vector<16x128xbf16>, vector<8x128xf32> -> vector<8x128xf32>
    %c0_5 = arith.constant 0 : index
    %c0_6 = arith.constant 0 : index
    %7 = vector.load %arg4[%c0_5, %c0_6] : memref<1x128xf32, #tpu.memory_space<vmem>>, vector<1x128xf32>
    %8 = vector.broadcast %7 : vector<1x128xf32> to vector<8x128xf32>
    %9 = arith.addf %6, %8 : vector<8x128xf32>
    %c0_7 = arith.constant 0 : index
    %c0_8 = arith.constant 0 : index
    %c0_9 = arith.constant 0 : index
    %10 = vector.load %arg5[%c0_7, %c0_8, %c0_9] : memref<1x8x128xf32, #tpu.memory_space<vmem>>, vector<1x8x128xf32>
    %11 = vector.shape_cast %10 : vector<1x8x128xf32> to vector<8x128xf32>
    %12 = vector.shape_cast %9 : vector<8x128xf32> to vector<1x8x128xf32>
    tpu.vector_store %arg5[%c0_7, %c0_8, %c0_9], %12 {strides = array<i32>} : memref<1x8x128xf32, #tpu.memory_space<vmem>>, vector<1x8x128xf32>,
    %c8_i32 = arith.constant 8 : i32
    %13 = arith.muli %arg1, %c8_i32 : i32
    %14 = tpu.iota {dimensions = array<i32: 0>} : vector<8x128xi32>
    %15 = vector.broadcast %13 : i32 to vector<8x128xi32>
    %16 = arith.addi %15, %14 : vector<8x128xi32>
    %c2_i32 = arith.constant 2 : i32
    %17 = vector.broadcast %c2_i32 : i32 to vector<8x128xi32>
    %18 = arith.cmpi slt, %16, %17 : vector<8x128xi32>
    %cst_10 = arith.constant 0.000000e+00 : f32
    %19 = vector.broadcast %cst_10 : f32 to vector<8x128xf32>
    %20 = arith.select %18, %9, %19 : vector<8x128xi1>, vector<8x128xf32>
    %c0_11 = arith.constant 0 : index
    %c0_12 = arith.constant 0 : index
    %c0_13 = arith.constant 0 : index
    %21 = vector.load %arg6[%c0_11, %c0_12, %c0_13] : memref<1x2x128xf32, #tpu.memory_space<vmem>>, vector<1x1x128xf32>
    %22 = vector.shape_cast %21 : vector<1x1x128xf32> to vector<1x128xf32>
    %cst_14 = arith.constant dense<0.000000e+00> : vector<128xf32>
    %23 = vector.multi_reduction <add>, %20, %cst_14 [0] : vector<8x128xf32> to vector<128xf32>
    %24 = vector.shape_cast %23 : vector<128xf32> to vector<1x128xf32>
    %25 = arith.addf %22, %24 : vector<1x128xf32>
    %c0_15 = arith.constant 0 : index
    %c0_16 = arith.constant 0 : index
    %c0_17 = arith.constant 0 : index
    %26 = vector.load %arg6[%c0_15, %c0_16, %c0_17] : memref<1x2x128xf32, #tpu.memory_space<vmem>>, vector<1x1x128xf32>
    %27 = vector.shape_cast %26 : vector<1x1x128xf32> to vector<1x128xf32>
    %28 = vector.shape_cast %25 : vector<1x128xf32> to vector<1x1x128xf32>
    tpu.vector_store %arg6[%c0_15, %c0_16, %c0_17], %28 {strides = array<i32>} : memref<1x2x128xf32, #tpu.memory_space<vmem>>, vector<1x1x128xf32>,
    %c0_18 = arith.constant 0 : index
    %c1 = arith.constant 1 : index
    %c0_19 = arith.constant 0 : index
    %29 = vector.load %arg6[%c0_18, %c1, %c0_19] : memref<1x2x128xf32, #tpu.memory_space<vmem>>, vector<1x1x128xf32>
    %30 = vector.shape_cast %29 : vector<1x1x128xf32> to vector<1x128xf32>
    %31 = arith.mulf %20, %20 : vector<8x128xf32>
    %cst_20 = arith.constant dense<0.000000e+00> : vector<128xf32>
    %32 = vector.multi_reduction <add>, %31, %cst_20 [0] : vector<8x128xf32> to vector<128xf32>
    %33 = vector.shape_cast %32 : vector<128xf32> to vector<1x128xf32>
    %34 = arith.addf %30, %33 : vector<1x128xf32>
    %c0_21 = arith.constant 0 : index
    %c1_22 = arith.constant 1 : index
    %c0_23 = arith.constant 0 : index
    %35 = vector.load %arg6[%c0_21, %c1_22, %c0_23] : memref<1x2x128xf32, #tpu.memory_space<vmem>>, vector<1x1x128xf32>
    %36 = vector.shape_cast %35 : vector<1x1x128xf32> to vector<1x128xf32>
    %37 = vector.shape_cast %34 : vector<1x128xf32> to vector<1x1x128xf32>
    tpu.vector_store %arg6[%c0_21, %c1_22, %c0_23], %37 {strides = array<i32>} : memref<1x2x128xf32, #tpu.memory_space<vmem>>, vector<1x1x128xf32>,
    return
  }
  func.func @transform_0(%arg0: i32, %arg1: i32) -> (i32, i32, i32) {
    %c0_i32 = arith.constant 0 : i32
    %c0_i32_0 = arith.constant 0 : i32
    return %arg0, %arg1, %c0_i32 : i32, i32, i32
  }
  func.func @transform_1(%arg0: i32, %arg1: i32) -> (i32, i32) {
    %c0_i32 = arith.constant 0 : i32
    %c0_i32_0 = arith.constant 0 : i32
    %c0_i32_1 = arith.constant 0 : i32
    return %c0_i32, %c0_i32_0 : i32, i32
  }
  func.func @transform_2(%arg0: i32, %arg1: i32) -> (i32, i32) {
    %c0_i32 = arith.constant 0 : i32
    %c0_i32_0 = arith.constant 0 : i32
    %c0_i32_1 = arith.constant 0 : i32
    return %c0_i32, %c0_i32_0 : i32, i32
  }
  func.func @transform_3(%arg0: i32, %arg1: i32) -> (i32, i32, i32) {
    %c0_i32 = arith.constant 0 : i32
    %c0_i32_0 = arith.constant 0 : i32
    return %arg0, %arg1, %c0_i32 : i32, i32, i32
  }
  func.func @transform_4(%arg0: i32, %arg1: i32) -> (i32, i32, i32) {
    %c0_i32 = arith.constant 0 : i32
    %c0_i32_0 = arith.constant 0 : i32
    %c0_i32_1 = arith.constant 0 : i32
    return %arg0, %c0_i32, %c0_i32_0 : i32, i32, i32
  }
}

</mosaic_0001>

<bundles_post_ra>
// kernel: _fc_forward.3
= control target key start
LH: loop header
LB: loop body
LE: loop exit
PB: predicated region body
PF: predicated region fallthrough
CT: control target
= control target key end

     0   :  { %9 = vsyncpa [#allocation3], 0  ;;  %s651_s0 = inlined_call_operand.vmem [shape: f32[4,8,128], index: 0, kind: input, shape index: {}]   ;;  %s652_s1 = inlined_call_operand.vmem [shape: f32[4,2,128], index: 1, kind: input, shape index: {}]   ;;  %s653_s2 = inlined_call_operand.vmem [shape: f32[4], index: 2, kind: input, shape index: {}]   ;;  %s654_s3 = inlined_call_operand.vmem [shape: f32[4], index: 3, kind: input, shape index: {}]   ;;  %s655_s4 = inlined_call_operand.vmem [shape: f32[4,8,128], index: 4, kind: output, shape index: {}]  }
   0x1   :  { %10 = vsyncpa [#allocation5], 0  ;;  %s584_s15 = smov 0   ;;  %s586_s16 = smov 0  }
   0x2   :  { %s588_s17 = smov 0  }
   0x3 LB: > { %s430_s18 = sadd.s32 4294967295, %s555_s17   ;;  %s28_s19 = sadd.s32 1, %s551_s16  ;;  %s555_s17 = sphi %s588_s17, %s16_s17   ;;  %s551_s16 = sphi %s586_s16, %s658_s16   ;;  %s547_s15 = sphi %s584_s15, %s657_s15  }
   0x4   : > { %p30_p0 = scmp.ge.s32.totalorder %s28_s19, 4  ;;  %p432_p1 = scmp.ge.s32.totalorder %s555_s17, 1 }
   0x5   : > { %p157_p2 = scmp.lt.s32.totalorder %s555_s17, 5  ;;  %p605_p4 = scmp.eq.s32.totalorder %s430_s18, 0 }
   0x6   : > { %s660_s19 = smov (%p30_p0, %s28_s19), 0  ;;  %s169_s23 = sshll.u32 %s653_s2, 4  ;;  %s170_s23 = int_to_ptr.vmem [resolvable:$true] %s169_s23 }
   0x7   : > { %p158_p3 = pnand %p432_p1, %p157_p2  ;;  %s179_s26 = sshll.u32 %s654_s3, 4  ;;  %s180_s26 = int_to_ptr.vmem [resolvable:$true] %s179_s26 }
   0x8   : > { %s557_s27 = smov [#allocation2]   ;;  %s558_s28 = smov [#allocation4]  }
   0x9   : > { %p456_p5 = pneg %p158_p3 }
   0xa   : > { %209 = sbr.rel (%p158_p3) target bundleno = 252 (0xfc), region = 36 }
   0xb   : > { %p457_p6 = pnand %p605_p4, %p456_p5 }
   0xd   : > { %459 = dma.vmem_to_smem (!%p457_p6), %s170_s23, 16, %s557_s27, [#allocation3]  }
   0xe   : > { %462 = dma.vmem_to_smem (!%p457_p6), %s180_s26, 16, %s558_s28, [#allocation5]  }
   0xf   : > { %538 = dma.done.wait (%p605_p4), [#allocation3], 16  }
  0x10   : > { %540 = vsyncadd (%p605_p4), [#allocation3], 4294967280 }
  0x11   : > { %542 = dma.done.wait (%p605_p4), [#allocation5], 16  }
  0x12   : > { %544 = vsyncadd (%p605_p4), [#allocation5], 4294967280 }
  0x13   : > { %221 = sfence }
  0x14   : > { %p250_p7 = scmp.lt.s32.totalorder %s547_s15, 3  ;;  %vm269_vm0 = vcmask 1040384   ;;  %s297_s10 = sld [smem:[#allocation2 + %s547_s15]] }
  0x15   : > { %s311_s11 = sld [smem:[#allocation4 + %s547_s15]] }
  0x16   : > { %s627_s29 = scalar_select %p250_p7, %s547_s15, 3 }
  0x18   : > { %s440_s30 = sshll.u32 %s627_s29, 1  ;;  %s439_s12 = sshll.u32 %s627_s29, 3 }
  0x19   : > { %s260_s7 = scalar_lea.vmem %s652_s1, %s440_s30  ;;  %s256_s18 = scalar_lea.vmem %s651_s0, %s439_s12 }
  0x1a   : > { %v268_v0 = vld [vmem:[%s260_s7] sm:$0x1]  ;;  %v281_v2 = vld [vmem:[%s260_s7 + $0x1] sm:$0x1]  ;;  %v309_v31 = vstv %s297_s10  ;;  %s267_s21 = scalar_lea.vmem %s655_s4, %s439_s12 }
  0x1b   : > { %v270_v1 = vsel %vm269_vm0, %v268_v0, 0.0  ;;  %v282_v3 = vsel %vm269_vm0, %v281_v2, 0.0  ;;  %v315_v34 = vld [vmem:[%s256_s18] sm:$0xff]  ;;  %v313_v35 = vstv %s311_s11 }
  0x1c   : > { %271 = vadd.xlane.f32.xlu0 %v270_v1 }
  0x24   : > { %283 = vadd.xlane.f32.xlu0 %v282_v3 }
  0x8f   : > { %v272_v4 = vpop.xlane.xlu0 %271 }
  0x90   : > { %v273_v5 = vrot.slane %v272_v4, 4 }
  0x92   : > { %v274_v6 = vadd.f32 %v273_v5, %v272_v4 }
  0x94   : > { %v275_v7 = vrot.slane %v274_v6, 2 }
  0x96   : > { %v276_v8 = vadd.f32 %v275_v7, %v274_v6 }
  0x97   : > { %v284_v9 = vpop.xlane.xlu0 %283 }
  0x98   : > { %v285_v10 = vrot.slane %v284_v9, 4  ;;  %v277_v11 = vrot.slane %v276_v8, 1 }
  0x9a   : > { %v286_v12 = vadd.f32 %v285_v10, %v284_v9  ;;  %v278_v13 = vadd.f32 %v277_v11, %v276_v8 }
  0x9c   : > { %v287_v14 = vrot.slane %v286_v12, 2  ;;  %444 = vpush %v278_v13 }
  0x9e   : > { %v288_v15 = vadd.f32 %v287_v14, %v286_v12 }
  0xa0   : > { %v289_v16 = vrot.slane %v288_v15, 1 }
  0xa2   : > { %v290_v17 = vadd.f32 %v289_v16, %v288_v15 }
  0xa4   : > { %446 = vpush %v290_v17 }
  0xcd   : > { %s445_s8 = spop %444 }
  0xce   : > { %v280_v18 = vstv %s445_s8 }
  0xcf   : > { %v293_v19 = vmul.f32 0.015625, %v280_v18 }
  0xd1   : > { %v295_v21 = vmul.f32 %v293_v19, %v293_v19 }
  0xd5   : > { %s447_s9 = spop %446 }
  0xd6   : > { %v292_v20 = vstv %s447_s9 }
  0xd7   : > { %v294_v22 = vmul.f32 0.015625, %v292_v20 }
  0xd9   : > { %v296_v23 = vsub.f32 %v294_v22, %v295_v21 }
  0xdb   : > { %v298_v24 = vadd.f32 1e-05, %v296_v23 }
  0xdd   : > { %493 = vrsqrt.f32 %v298_v24  ;;  %vm305_vm2 = vweird.f32 %v298_v24 }
  0xe3   : > { %v494_v25 = vpop.eup %493 }
  0xe4   : > { %v300_v26 = vmul.f32 %v494_v25, %v298_v24  ;;  %vm306_vm1 = vweird.f32 %v494_v25 }
  0xe5   : > { %vm307_vm3 = vmor %vm305_vm2, %vm306_vm1 }
  0xe6   : > { %v301_v27 = vmul.f32 %v494_v25, %v300_v26 }
  0xe8   : > { %v302_v28 = vmul.f32 0.5, %v301_v27 }
  0xea   : > { %v303_v29 = vsub.f32 1.5, %v302_v28 }
  0xec   : > { %v304_v30 = vmul.f32 %v494_v25, %v303_v29 }
  0xee   : > { %v308_v32 = vsel %vm307_vm3, %v494_v25, %v304_v30 }
  0xef   : > { %v310_v33 = vmul.f32 %v309_v31, %v308_v32 }
  0xf1   : > { %v312_v36 = vmul.f32 %v310_v33, %v293_v19  ;;  %v316_v38 = vmul.f32 %v315_v34, %v310_v33 }
  0xf3   : > { %v314_v37 = vsub.f32 %v313_v35, %v312_v36 }
  0xf5   : > { %v317_v39 = vadd.f32 %v316_v38, %v314_v37 }
  0xf7   : > { %v318_v40 = vmul.f32 0.01, %v317_v39 }
  0xf9   : > { %v319_v41 = vmax.f32 %v317_v39, %v318_v40 }
  0xfb   : > { %320 = vst [vmem:[%s267_s21] sm:$0xff] %v319_v41 }
  0xfc PF: > { %s16_s17 = sadd.s32 1, %s555_s17   ;;  %s657_s15 = smov %s551_s16 }
  0xfd   : > { %p13_p8 = scmp.ge.s32.totalorder %s16_s17, 6   ;;  %s658_s16 = smov %s660_s19 }
  0xff   :  { %15 = sbr.rel (!%p13_p8) target bundleno = 3 (0x3), region = 78 }
 0x104   :  { %346 = vsyncpa [#allocation3], 1 }
 0x105   :  { %348 = vsyncpa [#allocation3 + $0x1], 1 }
 0x106   :  { %349 = vsyncpa [#allocation5], 1 }

// kernel: _fc_forward.2
= control target key start
LH: loop header
LB: loop body
LE: loop exit
PB: predicated region body
PF: predicated region fallthrough
CT: control target
= control target key end

     0   :  { %s495_s15 = smov 0   ;;  %s497_s16 = smov 0   ;;  %s544_s0 = inlined_call_operand.vmem [shape: bf16[4,8,16], index: 0, kind: input, shape index: {}]   ;;  %s545_s1 = inlined_call_operand.vmem [shape: bf16[16,128], index: 1, kind: input, shape index: {}]   ;;  %s546_s2 = inlined_call_operand.vmem [shape: f32[1,128], index: 2, kind: input, shape index: {}]   ;;  %s547_s3 = inlined_call_operand.vmem [shape: f32[4,8,128], index: 3, kind: output, shape index: {0}]   ;;  %s548_s4 = inlined_call_operand.vmem [shape: f32[4,2,128], index: 4, kind: output, shape index: {1}]  }
   0x1   :  { %s499_s17 = smov 0  }
   0x2 LB: > { %s27_s18 = sadd.s32 1, %s463_s16  ;;  %p407_p0 = scmp.ge.s32.totalorder %s467_s17, 1  ;;  %s467_s17 = sphi %s499_s17, %s15_s17   ;;  %s463_s16 = sphi %s497_s16, %s550_s16   ;;  %s459_s15 = sphi %s495_s15, %s549_s15  }
   0x3   : > { %p29_p1 = scmp.ge.s32.totalorder %s27_s18, 4  ;;  %p183_p2 = scmp.lt.s32.totalorder %s467_s17, 5 }
   0x5   : > { %s552_s18 = smov (%p29_p1, %s27_s18), 0  ;;  %p184_p3 = pnand %p407_p0, %p183_p2 }
   0x6   : > { %p217_p4 = scmp.lt.s32.totalorder (!%p184_p3), %s459_s15, 3 }
   0x7   : > { %187 = sbr.rel (%p184_p3) target bundleno = 162 (0xa2), region = 32 }
   0xc   : > { %v418_v0 = vld [vmem:[%s545_s1] sm:$0xff]  ;;  %s554_s15 = smov (!%p217_p4, %s459_s15), 3  ;;  %vm254_vm0 = vcmask 130048   ;;  %v469_v1 = vmov 0.0   ;;  %v273_v3 = vlaneseq }
   0xd   : > { %265 = vmatpush.bf16.msra.mxu0 %v418_v0  ;;  %s408_s21 = sshll.u32 %s554_s15, 2  ;;  %s410_s22 = sshll.u32 %s554_s15, 1  ;;  %v444_v5 = vld [vmem:[%s546_s2] ss:$0 sm:$0xff] }
   0xe   : > { %s223_s25 = scalar_lea.vmem %s544_s0, %s408_s21  ;;  %s522_s28 = scalar_lea.vmem %s548_s4, %s410_s22  ;;  %v274_v4 = vshrl.u32 %v273_v3, 7 }
   0xf   : > { %240 = vst [vmem:[%s522_s28] sm:$0x3] %v469_v1  ;;  %v241_v2 = vld [vmem:[%s223_s25] sm:$0xf]  ;;  %s409_s29 = sshll.u32 %s554_s15, 3 }
  0x10   : > { %415 = vmatmul.msk.bf16.vlgmr.msra.gmra.mxu0 %vm254_vm0, %v241_v2  ;;  %s230_s8 = scalar_lea.vmem %s547_s3, %s409_s29  ;;  %vm277_vm1 = vcmp.lt.s32.totalorder %v274_v4, 2 }
  0x16   : > { %v279_v20 = vld [vmem:[%s522_s28] sm:$0x1]  ;;  %v288_v23 = vld [vmem:[%s522_s28 + $0x1] sm:$0x1] }
  0x8d   : > { %v267_v6 = vpop.f32.mrf.mxu0 }
  0x8e   : > { %v268_v7 = vadd.f32 %v444_v5, %v267_v6 }
  0x90   : > { %271 = vst [vmem:[%s230_s8] sm:$0xff] %v268_v7  ;;  %v278_v8 = vsel %vm277_vm1, %v268_v7, 0.0 }
  0x91   : > { %v280_v9 = vrot.slane %v278_v8, 4  ;;  %v289_v10 = vmul.f32 %v278_v8, %v278_v8 }
  0x93   : > { %v281_v11 = vadd.f32 %v280_v9, %v278_v8  ;;  %v290_v12 = vrot.slane %v289_v10, 4 }
  0x95   : > { %v282_v13 = vrot.slane %v281_v11, 2  ;;  %v291_v14 = vadd.f32 %v290_v12, %v289_v10  ;;  %v269_v15 = vpop.f32.mrf.mxu0 }
  0x97   : > { %v283_v16 = vadd.f32 %v282_v13, %v281_v11  ;;  %v292_v17 = vrot.slane %v291_v14, 2 }
  0x99   : > { %v284_v18 = vrot.slane %v283_v16, 1  ;;  %v293_v19 = vadd.f32 %v292_v17, %v291_v14 }
  0x9b   : > { %v285_v21 = vadd.f32 %v284_v18, %v283_v16  ;;  %v294_v22 = vrot.slane %v293_v19, 1 }
  0x9d   : > { %v286_v24 = vadd.f32 %v285_v21, %v279_v20  ;;  %v295_v25 = vadd.f32 %v294_v22, %v293_v19 }
  0x9f   : > { %287 = vst [vmem:[%s522_s28] sm:$0x1] %v286_v24  ;;  %v296_v26 = vadd.f32 %v295_v25, %v288_v23 }
  0xa1   : > { %297 = vst [vmem:[%s522_s28 + $0x1] sm:$0x1] %v296_v26 }
  0xa2 PF: > { %s15_s17 = sadd.s32 1, %s467_s17   ;;  %s549_s15 = smov %s463_s16 }
  0xa3   : > { %p12_p5 = scmp.ge.s32.totalorder %s15_s17, 6   ;;  %s550_s16 = smov %s552_s18 }
  0xa5   :  { %14 = sbr.rel (!%p12_p5) target bundleno = 2 (0x2), region = 78 }

</bundles_post_ra>
